<compile_context>
chip_gen: v7x
topology: tpu7x:2x2x1
jax: 0.10.0
libtpu: 0.0.40
codegen_flags: <defaults>
</compile_context>

<pallas_src>
import math

import jax
import jax.numpy as jnp
from jax import lax
from jax.experimental import pallas as pl
from jax.experimental.pallas import tpu as pltpu


def _round_up(a, b):
    return ((a + b - 1) // b) * b


def _pick_tile(dim, max_tile, fallback, base=128):
    """Pick a tile size for a lane-major dim.

    Prefers (a) the whole dim if it fits (single tile, no 128-divisibility
    needed), then (b) the largest multiple of `base` that exactly divides the
    dim, then (c) a padded fallback tile.
    """
    if dim <= max_tile:
        return dim
    t = (max_tile // base) * base
    while t >= base:
        if dim % t == 0:
            return t
        t -= base
    return max(base, min(fallback, (max_tile // base) * base))


def _geglu_kernel(x_ref, w_ref, b_ref, o_ref, acc_ref):
    """One grid step: acc += x_tile @ w_packed_tile; finalize with bias + GELU gate.

    x_ref:   (tm, tk)
    w_ref:   (tk, 2*tn)   -- [value tile | gate tile] packed side by side
    b_ref:   (1, 2*tn)
    o_ref:   (tm, tn)
    acc_ref: (tm, 2*tn) f32 scratch, resident across the K axis
    """
    k = pl.program_id(2)

    @pl.when(k == 0)
    def _():
        acc_ref[...] = jnp.zeros_like(acc_ref)

    acc_ref[...] += jnp.dot(
        x_ref[...], w_ref[...], preferred_element_type=jnp.float32
    )

    @pl.when(k == pl.num_programs(2) - 1)
    def _():
        acc = acc_ref[...] + b_ref[...].astype(jnp.float32)
        tn = o_ref.shape[-1]
        a = acc[:, :tn]          # value half
        g = acc[:, tn:]          # gate half
        # Exact (erf-based) GELU, matching torch.nn.functional.gelu default.
        gelu_g = 0.5 * g * (1.0 + lax.erf(g * (1.0 / math.sqrt(2.0))))
        o_ref[...] = (a * gelu_g).astype(o_ref.dtype)


def geglu_prepare(weight, bias, *, tn_max=256, tk_max=1024):
    """One-time layout prep (do this at model init and cache the result).

    weight: (2*dim_out, dim_in)  -- PyTorch nn.Linear layout
    bias:   (2*dim_out,)
    Packs the transposed weight so that N-tile j holds [value_j | gate_j]
    contiguously -> one MXU dot per grid step in the kernel.
    """
    two_dout, dim_in = weight.shape
    dim_out = two_dout // 2

    tn = _pick_tile(dim_out, tn_max, fallback=128)
    n_pad = _round_up(dim_out, tn)
    n_tiles = n_pad // tn

    tk = _pick_tile(dim_in, tk_max, fallback=512)
    k_pad = _round_up(dim_in, tk)
    k_tiles = k_pad // tk

    w_t = weight.T                       # (dim_in, 2*dim_out) -- done once, cached
    wx = w_t[:, :dim_out]
    wg = w_t[:, dim_out:]

    def _pad_w(w):
        return jnp.pad(w, ((0, k_pad - dim_in), (0, n_pad - dim_out)))

    wx_p = _pad_w(wx).reshape(k_pad, n_tiles, tn)
    wg_p = _pad_w(wg).reshape(k_pad, n_tiles, tn)
    w_packed = jnp.concatenate([wx_p, wg_p], axis=-1).reshape(
        k_pad, n_tiles * 2 * tn
    )

    bx = jnp.pad(bias[:dim_out], (0, n_pad - dim_out)).reshape(n_tiles, tn)
    bg = jnp.pad(bias[dim_out:], (0, n_pad - dim_out)).reshape(n_tiles, tn)
    b_packed = jnp.concatenate([bx, bg], axis=-1).reshape(1, n_tiles * 2 * tn)

    return dict(
        w=w_packed, b=b_packed,
        dim_in=dim_in, dim_out=dim_out,
        tn=tn, tk=tk, n_pad=n_pad, k_pad=k_pad,
        n_tiles=n_tiles, k_tiles=k_tiles,
    )


def geglu_apply(params, x, *, tm_pref=256):
    """x: (..., dim_in) -> (..., dim_out), using prepared/packed parameters."""
    dim_in = params["dim_in"]
    dim_out = params["dim_out"]
    tn, tk = params["tn"], params["tk"]
    n_pad, k_pad = params["n_pad"], params["k_pad"]
    n_tiles, k_tiles = params["n_tiles"], params["k_tiles"]

    lead = x.shape[:-1]
    m = math.prod(lead)                      # jit-safe (static shapes)
    x2 = x.reshape(m, dim_in)

    # Balanced row tiling: big tiles, minimal padded rows.
    if m <= tm_pref:
        m_tiles = 1
        tm = _round_up(m, 8)
    else:
        m_tiles = -(-m // tm_pref)
        tm = _round_up(-(-m // m_tiles), 8)
    m_pad = tm * m_tiles

    if m_pad != m or k_pad != dim_in:
        x2 = jnp.pad(x2, ((0, m_pad - m), (0, k_pad - dim_in)))

    itemsize = jnp.dtype(x.dtype).itemsize
    cost = pl.CostEstimate(
        flops=2 * m_pad * k_pad * (2 * n_pad),
        transcendentals=m_pad * n_pad,
        bytes_accessed=(
            m_pad * k_pad * itemsize                      # x
            + k_pad * 2 * n_pad * params["w"].dtype.itemsize  # packed W
            + 2 * n_pad * params["b"].dtype.itemsize          # packed bias
            + m_pad * n_pad * itemsize                    # out
        ),
    )

    out = pl.pallas_call(
        _geglu_kernel,
        out_shape=jax.ShapeDtypeStruct((m_pad, n_pad), x.dtype),
        grid_spec=pltpu.PrefetchScalarGridSpec(
            num_scalar_prefetch=0,
            grid=(m_tiles, n_tiles, k_tiles),     # K last, reduction axis
            in_specs=[
                pl.BlockSpec((tm, tk), lambda i, j, k: (i, k)),        # x tile
                pl.BlockSpec((tk, 2 * tn), lambda i, j, k: (k, j)),    # packed W
                pl.BlockSpec((1, 2 * tn), lambda i, j, k: (0, j)),     # packed bias
            ],
            out_specs=pl.BlockSpec((tm, tn), lambda i, j, k: (i, j)),
            scratch_shapes=[pltpu.VMEM((tm, 2 * tn), jnp.float32)],
        ),
        compiler_params=pltpu.CompilerParams(
            dimension_semantics=("parallel", "parallel", "arbitrary"),
            vmem_limit_bytes=48 * 1024 * 1024,
        ),
        cost_estimate=cost,
    )(x2, params["w"], params["b"])

    out = out[:m, :dim_out]
    return out.reshape(*lead, dim_out)


def geglu(x, weight, bias, *, tm_pref=256):
    """Convenience wrapper. For repeated calls, call geglu_prepare once at model
    init and reuse the returned params with geglu_apply."""
    params = geglu_prepare(weight, bias)
    return geglu_apply(params, x, tm_pref=tm_pref)


def _reference(x, weight, bias):
    dim_out = weight.shape[0] // 2
    proj = x @ weight.T + bias
    a, g = proj[..., :dim_out], proj[..., dim_out:]
    return a * (0.5 * g * (1.0 + lax.erf(g / math.sqrt(2.0))))


if __name__ == "__main__":
    key = jax.random.PRNGKey(0)

    # --- Test 1: small shapes consistent with GEGLU (batch=2, seq=8, dim_in=32) ---
    batch, seq, dim_in, dim_out = 2, 8, 32, 32
    k1, k2, k3, key = jax.random.split(key, 4)
    x = jax.random.normal(k1, (batch, seq, dim_in), dtype=jnp.float32)
    bound = 1.0 / math.sqrt(dim_in)
    weight = jax.random.uniform(k2, (2 * dim_out, dim_in), jnp.float32, -bound, bound)
    bias = jax.random.uniform(k3, (2 * dim_out,), jnp.float32, -bound, bound)

    params = geglu_prepare(weight, bias)          # layout prep done once (cacheable)
    out = jax.block_until_ready(geglu_apply(params, x))
    ref = _reference(x, weight, bias)
    assert out.shape == (batch, seq, dim_out)
    assert jnp.allclose(out, ref, atol=1e-5, rtol=1e-5)

    # --- Test 2: exercise multi-tile N and the K-accumulator path ---
    batch2, seq2, din2, dout2 = 2, 24, 256, 384
    k1, k2, k3, key = jax.random.split(key, 4)
    x2 = jax.random.normal(k1, (batch2, seq2, din2), dtype=jnp.float32)
    bound2 = 1.0 / math.sqrt(din2)
    w2 = jax.random.uniform(k2, (2 * dout2, din2), jnp.float32, -bound2, bound2)
    b2 = jax.random.uniform(k3, (2 * dout2,), jnp.float32, -bound2, bound2)

    params2 = geglu_prepare(w2, b2, tk_max=128)   # force k_tiles > 1
    out2 = jax.block_until_ready(geglu_apply(params2, x2))
    ref2 = _reference(x2, w2, b2)
    assert out2.shape == (batch2, seq2, dout2)
    assert jnp.allclose(out2, ref2, atol=1e-4, rtol=1e-4)

    print("KERNEL_OK")
</pallas_src>

<mosaic_0001>
module attributes {stable_mosaic.version = 11 : i64} {
  func.func @_geglu_kernel(%arg0: i32, %arg1: i32, %arg2: i32, %arg3: memref<16x32xf32, #tpu.memory_space<vmem>>, %arg4: memref<32x64xf32, #tpu.memory_space<vmem>>, %arg5: memref<1x64xf32, #tpu.memory_space<vmem>>, %arg6: memref<16x32xf32, #tpu.memory_space<vmem>>, %arg7: memref<16x64xf32, #tpu.memory_space<vmem>>) attributes {dimension_semantics = [#tpu.dimension_semantics<parallel>, #tpu.dimension_semantics<parallel>, #tpu.dimension_semantics<arbitrary>], iteration_bounds = array<i64: 1, 1, 1>, scalar_prefetch = 0 : i64, scratch_operands = 1 : i64, tpu.core_type = #tpu.core_type<tc>, window_params = [{transform_indices = @transform_0, window_bounds = array<i64: 16, 32>}, {transform_indices = @transform_1, window_bounds = array<i64: 32, 64>}, {transform_indices = @transform_2, window_bounds = array<i64: 1, 64>}, {transform_indices = @transform_3, window_bounds = array<i64: 16, 32>}]} {
    %c0_i32 = arith.constant 0 : i32
    %0 = arith.cmpi eq, %arg2, %c0_i32 : i32
    %1 = arith.extui %0 : i1 to i32
    %c0_i32_0 = arith.constant 0 : i32
    %2 = arith.cmpi ne, %1, %c0_i32_0 : i32
    scf.if %2 {
      %cst_10 = arith.constant 0.000000e+00 : f32
      %12 = vector.broadcast %cst_10 : f32 to vector<16x64xf32>
      %c0_11 = arith.constant 0 : index
      %c0_12 = arith.constant 0 : index
      %13 = vector.load %arg7[%c0_11, %c0_12] : memref<16x64xf32, #tpu.memory_space<vmem>>, vector<16x64xf32>
      tpu.vector_store %arg7[%c0_11, %c0_12], %12 {strides = array<i32>} : memref<16x64xf32, #tpu.memory_space<vmem>>, vector<16x64xf32>,
    } else {
    }
    %c0 = arith.constant 0 : index
    %c0_1 = arith.constant 0 : index
    %3 = vector.load %arg7[%c0, %c0_1] : memref<16x64xf32, #tpu.memory_space<vmem>>, vector<16x64xf32>
    %c0_2 = arith.constant 0 : index
    %c0_3 = arith.constant 0 : index
    %4 = vector.load %arg3[%c0_2, %c0_3] : memref<16x32xf32, #tpu.memory_space<vmem>>, vector<16x32xf32>
    %c0_4 = arith.constant 0 : index
    %c0_5 = arith.constant 0 : index
    %5 = vector.load %arg4[%c0_4, %c0_5] : memref<32x64xf32, #tpu.memory_space<vmem>>, vector<32x64xf32>
    %cst = arith.constant dense<0.000000e+00> : vector<16x64xf32>
    %6 = tpu.matmul %4, %5, %cst {dimension_numbers = #tpu.dot_dimension_numbers<[1], [0], [0], [1], [0, 0, 1, 1], [], []>} : vector<16x32xf32>, vector<32x64xf32>, vector<16x64xf32> -> vector<16x64xf32>
    %7 = arith.addf %3, %6 : vector<16x64xf32>
    %c0_6 = arith.constant 0 : index
    %c0_7 = arith.constant 0 : index
    %8 = vector.load %arg7[%c0_6, %c0_7] : memref<16x64xf32, #tpu.memory_space<vmem>>, vector<16x64xf32>
    tpu.vector_store %arg7[%c0_6, %c0_7], %7 {strides = array<i32>} : memref<16x64xf32, #tpu.memory_space<vmem>>, vector<16x64xf32>,
    %c0_i32_8 = arith.constant 0 : i32
    %9 = arith.cmpi eq, %arg2, %c0_i32_8 : i32
    %10 = arith.extui %9 : i1 to i32
    %c0_i32_9 = arith.constant 0 : i32
    %11 = arith.cmpi ne, %10, %c0_i32_9 : i32
    scf.if %11 {
      %c0_10 = arith.constant 0 : index
      %c0_11 = arith.constant 0 : index
      %12 = vector.load %arg7[%c0_10, %c0_11] : memref<16x64xf32, #tpu.memory_space<vmem>>, vector<16x64xf32>
      %c0_12 = arith.constant 0 : index
      %c0_13 = arith.constant 0 : index
      %13 = vector.load %arg5[%c0_12, %c0_13] : memref<1x64xf32, #tpu.memory_space<vmem>>, vector<1x64xf32>
      %14 = vector.broadcast %13 : vector<1x64xf32> to vector<16x64xf32>
      %15 = arith.addf %12, %14 : vector<16x64xf32>
      %16 = vector.extract_strided_slice %15 {offsets = [0, 0], sizes = [16, 32], strides = [1, 1]} : vector<16x64xf32> to vector<16x32xf32>
      %17 = vector.extract_strided_slice %15 {offsets = [0, 32], sizes = [16, 32], strides = [1, 1]} : vector<16x64xf32> to vector<16x32xf32>
      %cst_14 = arith.constant 5.000000e-01 : f32
      %18 = vector.broadcast %cst_14 : f32 to vector<16x32xf32>
      %19 = arith.mulf %18, %17 : vector<16x32xf32>
      %cst_15 = arith.constant 0.707106769 : f32
      %20 = vector.broadcast %cst_15 : f32 to vector<16x32xf32>
      %21 = arith.mulf %17, %20 : vector<16x32xf32>
      %22 = math.erf %21 : vector<16x32xf32>
      %cst_16 = arith.constant 1.000000e+00 : f32
      %23 = vector.broadcast %cst_16 : f32 to vector<16x32xf32>
      %24 = arith.addf %23, %22 : vector<16x32xf32>
      %25 = arith.mulf %19, %24 : vector<16x32xf32>
      %26 = arith.mulf %16, %25 : vector<16x32xf32>
      %c0_17 = arith.constant 0 : index
      %c0_18 = arith.constant 0 : index
      %27 = vector.load %arg6[%c0_17, %c0_18] : memref<16x32xf32, #tpu.memory_space<vmem>>, vector<16x32xf32>
      tpu.vector_store %arg6[%c0_17, %c0_18], %26 {strides = array<i32>} : memref<16x32xf32, #tpu.memory_space<vmem>>, vector<16x32xf32>,
    } else {
    }
    return
  }
  func.func @transform_0(%arg0: i32, %arg1: i32, %arg2: i32) -> (i32, i32) {
    %c0_i32 = arith.constant 0 : i32
    return %arg0, %arg2 : i32, i32
  }
  func.func @transform_1(%arg0: i32, %arg1: i32, %arg2: i32) -> (i32, i32) {
    %c0_i32 = arith.constant 0 : i32
    return %arg2, %arg1 : i32, i32
  }
  func.func @transform_2(%arg0: i32, %arg1: i32, %arg2: i32) -> (i32, i32) {
    %c0_i32 = arith.constant 0 : i32
    %c0_i32_0 = arith.constant 0 : i32
    return %c0_i32, %arg1 : i32, i32
  }
  func.func @transform_3(%arg0: i32, %arg1: i32, %arg2: i32) -> (i32, i32) {
    %c0_i32 = arith.constant 0 : i32
    return %arg0, %arg1 : i32, i32
  }
}

</mosaic_0001>

<bundles_post_ra>
// kernel: tpu_custom_call.1
= control target key start
LH: loop header
LB: loop body
LE: loop exit
PB: predicated region body
PF: predicated region fallthrough
CT: control target
= control target key end

     0   :  { %8 = vsyncpa [#allocation4], 0  ;;  %s393_s0 = inlined_call_operand.hbm [shape: f32[16,32], index: 0, kind: input, shape index: {}]   ;;  %s394_s1 = inlined_call_operand.hbm [shape: f32[32,64], index: 1, kind: input, shape index: {}]   ;;  %s395_s2 = inlined_call_operand.vmem [shape: f32[1,64], index: 2, kind: input, shape index: {}]   ;;  %s396_s3 = inlined_call_operand.hbm [shape: f32[16,32], index: 3, kind: output, shape index: {}]  }
   0x1   :  { %9 = vsyncpa [#allocation7], 0 }
   0x2   :  { %10 = vsyncpa [#allocation5], 0  ;;  %s310_s12 = smov [#allocation3]   ;;  %s238_s16 = scalar_lea.hbm %s393_s0, 256 }
   0x3   :  { %s16_s13 = sshll.u32 %s310_s12, 4  ;;  %p239_p0 = scmp.ne.s32.totalorder %s393_s0, %s238_s16  ;;  %s17_s13 = int_to_ptr.vmem [resolvable:$true] %s16_s13 }
   0x4   :  { %p242_p1 = scmp.lt.u32.totalorder %s238_s16, %s393_s0 }
   0x6   :  { %p244_p2 = pnand %p242_p1, %p239_p0 }
   0x8   :  { %247 = shalt.err (!%p244_p2)
}
   0x9   :  { %s248_s21 = scalar_lea.vmem %s17_s13, 256  ;;  %p253_p4 = scmp.lt.s32.totalorder %s17_s13, %s17_s13 }
   0xa   :  { %p249_p3 = scmp.ne.s32.totalorder %s17_s13, %s248_s21  ;;  %p254_p5 = scmp.lt.s32.totalorder %s248_s21, %s248_s21 }
   0xc   :  { %p255_p6 = por %p254_p5, %p253_p4 }
   0xe   :  { %p256_p7 = pnand %p255_p6, %p249_p3 }
  0x10   :  { %259 = shalt.err (!%p256_p7)
}
  0x11   :  { %s311_s22 = smov 128   ;;  %s312_s23 = smov 8  }
  0x12   :  { %22 = dma.hbm_to_vmem [thread:$0]  %s393_s0, 256, %s17_s13, [#allocation4], %s311_s22, %s311_s22, %s312_s23  }
  0x13   :  { %s313_s26 = smov [#allocation6]   ;;  %s260_s30 = scalar_lea.hbm %s394_s1, 512 }
  0x14   :  { %s28_s27 = sshll.u32 %s313_s26, 4  ;;  %p261_p8 = scmp.ne.s32.totalorder %s394_s1, %s260_s30  ;;  %s29_s27 = int_to_ptr.vmem [resolvable:$true] %s28_s27 }
  0x15   :  { %p264_p9 = scmp.lt.u32.totalorder %s260_s30, %s394_s1 }
  0x17   :  { %p266_p10 = pnand %p264_p9, %p261_p8 }
  0x19   :  { %269 = shalt.err (!%p266_p10)
}
  0x1a   :  { %s270_s8 = scalar_lea.vmem %s29_s27, 512  ;;  %p275_p12 = scmp.lt.s32.totalorder %s29_s27, %s29_s27 }
  0x1b   :  { %p271_p11 = scmp.ne.s32.totalorder %s29_s27, %s270_s8  ;;  %p276_p13 = scmp.lt.s32.totalorder %s270_s8, %s270_s8 }
  0x1d   :  { %p277_p0 = por %p276_p13, %p275_p12 }
  0x1f   :  { %p278_p1 = pnand %p277_p0, %p271_p11 }
  0x21   :  { %281 = shalt.err (!%p278_p1)
}
  0x22   :  { %34 = dma.hbm_to_vmem [thread:$0]  %s394_s1, 512, %s29_s27, [#allocation7], %s311_s22, %s311_s22, %s312_s23  }
  0x23   :  { %304 = dma.done.wait [#allocation4], 256  }
  0x24   :  { %305 = vsyncadd [#allocation4], 4294967040 }
  0x25   :  { %306 = dma.done.wait [#allocation7], 512  }
  0x26   :  { %307 = vsyncadd [#allocation7], 4294966784  ;;  %vm47_vm0 = vcmask 523264   ;;  %v314_v0 = vmov 0.0   ;;  %vm58_vm1 = vcmask 261120   ;;  %v54_v1 = vld [vmem:[#allocation6] sm:$0xff] }
  0x27   :  { %49 = vst.msk [vmem:[#allocation2 + $0x8] sm:$0xff] %vm47_vm0, %v314_v0  ;;  %48 = vst.msk [vmem:[#allocation2] sm:$0xff] %vm47_vm0, %v314_v0  ;;  %v55_v2 = vld [vmem:[#allocation6 + $0x8] sm:$0xff]  ;;  %v56_v3 = vld [vmem:[#allocation6 + $0x10] sm:$0xff]  ;;  %s315_s11 = smov 96  }
  0x28   :  { %v219_v4 = vpack.c.bf16 %v55_v2, %v54_v1  ;;  %v57_v5 = vld [vmem:[#allocation6 + $0x18] sm:$0xff]  ;;  %v52_v6 = vld [vmem:[#allocation3] sm:$0xff]  ;;  %v201_v15 = vld [vmem:[%s395_s2] ss:$0 sm:$0xff]  ;;  %s316_s2 = smov [#allocation8]  }
  0x29   :  { %v223_v7 = vpack.c.bf16 %v57_v5, %v56_v3  ;;  %216 = vmatprep.mubr.msk.f32.mxu0 %vm58_vm1, %v52_v6  ;;  %v53_v8 = vld [vmem:[#allocation3 + $0x8] sm:$0xff]  ;;  %s186_s12 = sshll.u32 %s316_s2, 4  ;;  %s187_s12 = int_to_ptr.vmem [resolvable:$true] %s186_s12 }
  0x2a   :  { %220 = vmatprep.subr.bf16.mxu0 %v219_v4  ;;  %s282_s13 = scalar_lea.vmem %s187_s12, 256  ;;  %p287_p3 = scmp.lt.s32.totalorder %s187_s12, %s187_s12 }
  0x2b   :  { %222 = vmatpush3.bf16.msra.mxu0 %v219_v4  ;;  %p283_p2 = scmp.ne.s32.totalorder %s187_s12, %s282_s13  ;;  %p288_p4 = scmp.lt.s32.totalorder %s282_s13, %s282_s13 }
  0x2c   :  { %224 = vmatprep.subr.bf16.mxu0 %v223_v7 }
  0x2d   :  { %p289_p5 = por %p288_p4, %p287_p3 }
  0x2e   :  { %v51_v9 = vld [vmem:[#allocation2 + $0x8] sm:$0xff]  ;;  %v50_v10 = vld [vmem:[#allocation2] sm:$0xff] }
  0x2f   :  { %226 = vmatpush3.bf16.msra.mxu0 %v223_v7  ;;  %p290_p6 = pnand %p289_p5, %p283_p2 }
  0x32   :  { %217 = vmatmul.mubr.msk.f32.vlgmr.msra.gmra.mrb[0].mxu0 %vm58_vm1, %v53_v8 }
 0x105   :  { %v218_v11 = vpop.f32.mrb[0].mxu0 }
 0x106   :  { %v141_v12 = vadd.f32 %v218_v11, %v51_v9  ;;  %v131_v13 = vpop.f32.mrb[1].mxu0 }
 0x107   :  { %v140_v14 = vadd.f32 %v131_v13, %v50_v10 }
 0x108   :  { %144 = vst.msk [vmem:[#allocation2 + $0x8] sm:$0xff] %vm47_vm0, %v141_v12 }
 0x109   :  { %143 = vst.msk [vmem:[#allocation2] sm:$0xff] %vm47_vm0, %v140_v14 }
 0x10f   :  { %v149_v16 = vld [vmem:[#allocation2 + $0x8] sm:$0xff] }
 0x110   :  { %v148_v17 = vld [vmem:[#allocation2] sm:$0xff]  ;;  %v158_v18 = vadd.f32 %v201_v15, %v149_v16 }
 0x111   :  { %v157_v19 = vadd.f32 %v201_v15, %v148_v17 }
 0x112   :  { %v162_v20 = vmul.f32 0.70710677, %v158_v18  ;;  %v160_v28 = vmul.f32 0.5, %v158_v18 }
 0x113   :  { %v161_v21 = vmul.f32 0.70710677, %v157_v19  ;;  %v159_v24 = vmul.f32 0.5, %v157_v19 }
 0x114   :  { %234 = verf.f32 %v162_v20 }
 0x115   :  { %236 = verf.f32 %v161_v21 }
 0x11e   :  { %v235_v22 = vpop.eup %234 }
 0x11f   :  { %v237_v23 = vpop.eup %236  ;;  %v166_v27 = vadd.f32 1.0, %v235_v22 }
 0x120   :  { %v165_v25 = vadd.f32 1.0, %v237_v23 }
 0x121   :  { %v168_v29 = vmul.f32 %v166_v27, %v160_v28 }
 0x122   :  { %v167_v26 = vmul.f32 %v165_v25, %v159_v24 }
 0x124   :  { %171 = vrot.lane.b32.xlu0 %v167_v26, %s315_s11 }
 0x128   :  { %173 = vrot.lane.b32.xlu0 %v168_v29, %s315_s11 }
 0x196   :  { %v172_v30 = vpop.permute.xlu0 %171 }
 0x197   :  { %v177_v31 = vmul.f32 %v172_v30, %v157_v19 }
 0x199   :  { %179 = vst.msk [vmem:[#allocation8] sm:$0xff] %vm58_vm1, %v177_v31 }
 0x19a   :  { %v174_v32 = vpop.permute.xlu0 %173 }
 0x19b   :  { %v178_v33 = vmul.f32 %v174_v32, %v158_v18 }
 0x19d   :  { %180 = vst.msk [vmem:[#allocation8 + $0x8] sm:$0xff] %vm58_vm1, %v178_v33 }
 0x19e   :  { %293 = shalt.err (!%p290_p6)
}
 0x19f   :  { %s294_s16 = scalar_lea.hbm %s396_s3, 256 }
 0x1a0   :  { %p295_p7 = scmp.ne.s32.totalorder %s396_s3, %s294_s16  ;;  %p298_p8 = scmp.lt.u32.totalorder %s294_s16, %s396_s3 }
 0x1a2   :  { %p300_p9 = pnand %p298_p8, %p295_p7 }
 0x1a4   :  { %303 = shalt.err (!%p300_p9)
}
 0x1a5   :  { %192 = dma.vmem_to_hbm [thread:$0]  %s187_s12, 256, %s396_s3, [#allocation5], %s311_s22, %s311_s22, %s312_s23  }
 0x1a6   :  { %308 = dma.done.wait [#allocation5], 256  }
 0x1a7   :  { %309 = vsyncadd [#allocation5], 4294967040 }
 0x1a8   :  { %196 = vsyncpa [#allocation4], 1 }
 0x1a9   :  { %197 = vsyncpa [#allocation7], 1 }
 0x1aa   :  { %198 = vsyncpa [#allocation5], 1 }

</bundles_post_ra>
